<compile_context>
chip_gen: v5e
topology: v5e:2x2
jax: 0.10.0
libtpu: 0.0.40
codegen_flags: <defaults>
</compile_context>

<pallas_src>
import functools

import jax
import jax.numpy as jnp
from jax.experimental import pallas as pl
from jax.experimental.pallas import tpu as pltpu


def _round_up(x, m):
    return (x + m - 1) // m * m


def _nbytes(a):
    return int(a.size) * a.dtype.itemsize


# ------------------------------ fused kernel -------------------------------

def _sams_fused_kernel(sql_idx_ref, x_idx_ref, sql_emb_ref, data_emb_ref,
                       w_ref, b_ref, out_ref, *, cfg):
    B = cfg["B"]
    nfield = cfg["nfield"]
    n_hyper = cfg["n_hyper"]
    hid = cfg["hid"]
    L = cfg["L"]
    K = cfg["K"]
    dout = cfg["dout"]
    d_sql = nfield * cfg["sql_nemb"]
    d_data = nfield * cfg["data_nemb"]
    arch_dim = L * K
    kd = K * dout

    # ---- in-kernel embedding gathers (indices in SMEM, tables in VMEM) ----
    def gather(idx_ref, emb_ref):
        rows = []
        for b in range(B):
            cols = []
            for f in range(nfield):
                idx = idx_ref[b, f]                            # SMEM scalar read
                cols.append(emb_ref[pl.ds(idx, 1), :])         # (1, nemb) dyn. sublane
            rows.append(jnp.concatenate(cols, axis=1))          # (1, nfield*nemb)
        return jnp.concatenate(rows, axis=0)                     # (B, nfield*nemb) f32

    sql_h = gather(sql_idx_ref, sql_emb_ref)                     # (B, d_sql)
    x_h = gather(x_idx_ref, data_emb_ref)                        # (B, d_data)

    # ---- HyperNet MLP: bf16 MXU matmuls, f32 VPU elementwise ----
    r = 0
    h = sql_h
    for i in range(n_hyper):
        din = d_sql if i == 0 else hid
        w = w_ref[r:r + din, 0:hid]                              # bf16 (din, hid)
        r += _round_up(din, 8)
        h = jnp.maximum(
            jnp.dot(h.astype(jnp.bfloat16), w,
                    preferred_element_type=jnp.float32)
            + b_ref[i:i + 1, 0:hid], 0.0)

    w = w_ref[r:r + hid, 0:arch_dim]
    r += _round_up(hid, 8)
    arch = (jnp.dot(h.astype(jnp.bfloat16), w,
                    preferred_element_type=jnp.float32)
            + b_ref[n_hyper:n_hyper + 1, 0:arch_dim])            # (B, L*K) f32

    # slab row offsets for the MoE layers and the gate-expand constant
    moe_offs = []
    for l in range(L):
        din = d_data if l == 0 else dout
        moe_offs.append((r, din))
        r += _round_up(din, 8)
    e_off = r

    # ---- MOENet: L layers of K softmax-gated experts (one MXU tile per layer) ----
    h = x_h
    for l in range(L):
        off, din = moe_offs[l]
        w = w_ref[off:off + din, 0:kd]                           # (din, K*dout) bf16
        bias = b_ref[n_hyper + 1 + l:n_hyper + 2 + l, 0:kd]      # (1,  K*dout) f32
        hk = jnp.maximum(
            jnp.dot(h.astype(jnp.bfloat16), w,
                    preferred_element_type=jnp.float32) + bias, 0.0)   # (B, K*dout)

        # per-group softmax over K: static lane slice of arch, f32 on VPU/EUP
        logits = arch[:, l * K:(l + 1) * K]                      # (B, K)
        m = jnp.max(logits, axis=-1, keepdims=True)
        e = jnp.exp(logits - m)
        gate = e / jnp.sum(e, axis=-1, keepdims=True)            # (B, K) f32

        # expand gate across K*dout lanes with one MXU matmul against a 0/1 constant
        expand = w_ref[e_off:e_off + K, 0:kd]                    # (K, K*dout) bf16 {0,1}
        gate_full = jnp.dot(gate.astype(jnp.bfloat16), expand,
                            preferred_element_type=jnp.float32)  # (B, K*dout)
        gated = gate_full * hk                                    # VPU f32

        # reduce over experts: static K-slice sum
        acc = gated[:, 0:dout]
        for k in range(1, K):
            acc = acc + gated[:, k * dout:(k + 1) * dout]
        h = acc                                                   # (B, dout)

    # ---- head (Dout = 1): VPU multiply + reduce (no 1-lane MXU pass) ----
    hr = n_hyper + 1 + L
    w_row = b_ref[hr:hr + 1, 0:dout]                              # (1, dout) f32
    b0 = b_ref[hr + 1:hr + 2, 0:1]                                # (1, 1)    f32
    out_ref[...] = jnp.sum(h * w_row, axis=-1, keepdims=True) + b0   # (B, 1)


# ------------------------------ host-side packing ----------------------------

def pack_params(params, *, L, K):
    """Pack all matmul weights into one bf16 (rows,128) slab and all biases /
    the head into one f32 (8,128) slab.  Layout must match the kernel's walk."""
    n_hyper = len(params["hyper_hidden"])
    hid = params["hyper_hidden"][0][0].shape[1]
    arch_dim = params["hyper_out_w"].shape[1]
    kd = params["moe_w"][0].shape[1]
    dout = kd // K
    LANES = 128
    assert max(hid, arch_dim, kd) <= LANES, "slab layout assumes <=128 lanes/block"

    def pad_block(w):
        din, cols = w.shape
        blk = jnp.zeros((_round_up(din, 8), LANES), jnp.float32)
        return blk.at[:din, :cols].set(w)

    blocks = [pad_block(w) for (w, _) in params["hyper_hidden"]]
    blocks.append(pad_block(params["hyper_out_w"]))
    blocks += [pad_block(w) for w in params["moe_w"]]
    # 0/1 gate-expand constant: expand[k, k*dout:(k+1)*dout] = 1
    expand = jnp.zeros((K, kd), jnp.float32)
    for k in range(K):
        expand = expand.at[k, k * dout:(k + 1) * dout].set(1.0)
    blocks.append(pad_block(expand))
    w_slab = jnp.concatenate(blocks, axis=0).astype(jnp.bfloat16)

    n_rows = n_hyper + 1 + L + 2
    b_slab = jnp.zeros((_round_up(n_rows, 8), LANES), jnp.float32)
    row = 0
    for (_, b) in params["hyper_hidden"]:
        b_slab = b_slab.at[row, :b.shape[1]].set(b[0])
        row += 1
    b_slab = b_slab.at[row, :arch_dim].set(params["hyper_out_b"][0])
    row += 1
    for l in range(L):
        b_slab = b_slab.at[row, :kd].set(params["moe_b"][l][0])
        row += 1
    b_slab = b_slab.at[row, :dout].set(params["head_w_row"][0])
    row += 1
    b_slab = b_slab.at[row, 0].set(params["head_b"][0, 0])
    return w_slab, b_slab


# ------------------------------ SAMS forward -------------------------------

def sams_forward(w_slab, b_slab, sql_emb, data_emb, x, sql, *, cfg):
    B = cfg["B"]
    nfield = cfg["nfield"]
    d_sql = nfield * cfg["sql_nemb"]
    d_data = nfield * cfg["data_nemb"]
    hid, L, K, dout = cfg["hid"], cfg["L"], cfg["K"], cfg["dout"]
    n_hyper = cfg["n_hyper"]
    arch_dim = L * K
    kd = K * dout

    kernel = functools.partial(_sams_fused_kernel, cfg=cfg)
    smem = pl.BlockSpec(memory_space=pltpu.MemorySpace.SMEM)
    vmem = pl.BlockSpec(memory_space=pltpu.MemorySpace.VMEM)

    flops = 2 * B * (d_sql * hid
                     + hid * hid * max(n_hyper - 1, 0)
                     + hid * arch_dim
                     + d_data * kd
                     + dout * kd * max(L - 1, 0)
                     + L * K * kd
                     + dout)
    bytes_accessed = sum(_nbytes(a) for a in
                         (sql, x, sql_emb, data_emb, w_slab, b_slab)) + B * 4

    return pl.pallas_call(
        kernel,
        out_shape=jax.ShapeDtypeStruct((B, 1), jnp.float32),
        in_specs=[smem, smem, vmem, vmem, vmem, vmem],
        out_specs=vmem,
        compiler_params=pltpu.CompilerParams(
            vmem_limit_bytes=4 * 1024 * 1024),   # real footprint ~60 KB
        cost_estimate=pl.CostEstimate(
            flops=int(flops), transcendentals=int(B * L * K),
            bytes_accessed=int(bytes_accessed)),
    )(sql, x, sql_emb, data_emb, w_slab, b_slab)


# --------------------------- deterministic params ---------------------------

def init_params(key, *, nfield, nfeat, sql_nemb, data_nemb,
                hid_layer_len, hyper_num_layers, moe_hid_layer_len, L, K):
    col_cardinality_sum = nfield + nfeat + 1
    keys = iter(jax.random.split(key, 128))

    def dense(din, dout_):
        w = jax.random.normal(next(keys), (din, dout_), jnp.float32) / jnp.sqrt(din)
        # MXU operands are bf16; quantize once so the f32 reference and the packed
        # bf16 slab share identical weight values.
        w = w.astype(jnp.bfloat16).astype(jnp.float32)
        b = jax.random.normal(next(keys), (1, dout_), jnp.float32) * 0.01
        return w, b

    params = {}
    params["sql_emb"] = jax.random.normal(
        next(keys), (col_cardinality_sum, sql_nemb), jnp.float32) * 0.1
    params["data_emb"] = jax.random.normal(
        next(keys), (nfeat, data_nemb), jnp.float32) * 0.1

    # HyperNet MLP: (nfield*sql_nemb) -> hid (x hyper_num_layers, ReLU) -> L*K
    hidden = []
    din = nfield * sql_nemb
    for _ in range(hyper_num_layers):
        hidden.append(dense(din, hid_layer_len))
        din = hid_layer_len
    params["hyper_hidden"] = hidden
    params["hyper_out_w"], params["hyper_out_b"] = dense(din, L * K)

    # MOENet: L layers of K experts, pre-concatenated to (Din, K*Dout) / (1, K*Dout)
    moe_w, moe_b = [], []
    din = nfield * data_nemb
    for _ in range(L):
        ws, bs = zip(*[dense(din, moe_hid_layer_len) for _ in range(K)])
        moe_w.append(jnp.concatenate(ws, axis=1))
        moe_b.append(jnp.concatenate(bs, axis=1))
        din = moe_hid_layer_len
    params["moe_w"] = moe_w
    params["moe_b"] = moe_b

    head_w, head_b = dense(din, 1)
    params["head_w_row"] = head_w.T        # (1, Din); stays f32 (VPU head reduce)
    params["head_b"] = head_b              # (1, 1)
    return params


# --------------------------- pure-JAX reference -----------------------------

def sams_reference(params, x, sql, *, L, K):
    B = x.shape[0]
    sql_h = jnp.take(params["sql_emb"], sql, axis=0).reshape(B, -1)
    h = sql_h
    for (w, b) in params["hyper_hidden"]:
        h = jnp.maximum(h @ w + b, 0.0)
    arch = h @ params["hyper_out_w"] + params["hyper_out_b"]       # (B, L*K)
    arch = jax.nn.softmax(arch.reshape(B, L, K), axis=-1)

    h = jnp.take(params["data_emb"], x, axis=0).reshape(B, -1)
    for l in range(L):
        w, b = params["moe_w"][l], params["moe_b"][l]
        dout = w.shape[1] // K
        hk = jnp.maximum(h @ w + b, 0.0).reshape(B, K, dout)
        h = jnp.einsum("bkd,bk->bd", hk, arch[:, l, :])
    return h @ params["head_w_row"].T + params["head_b"]


# ---------------------------------- main ------------------------------------

if __name__ == "__main__":
    # args (small, synthetic)
    B = 2
    nfield = 4
    nfeat = 16
    sql_nemb = 8
    data_nemb = 8
    hid_layer_len = 32
    hyper_num_layers = 2
    moe_hid_layer_len = 32
    L = 2          # moe_num_layers
    K = 4
    col_cardinality_sum = nfield + nfeat + 1

    key = jax.random.PRNGKey(0)
    kp, kx, ks = jax.random.split(key, 3)

    params = init_params(
        kp, nfield=nfield, nfeat=nfeat, sql_nemb=sql_nemb, data_nemb=data_nemb,
        hid_layer_len=hid_layer_len, hyper_num_layers=hyper_num_layers,
        moe_hid_layer_len=moe_hid_layer_len, L=L, K=K)

    cfg = dict(B=B, nfield=nfield, sql_nemb=sql_nemb, data_nemb=data_nemb,
               n_hyper=hyper_num_layers, hid=hid_layer_len,
               L=L, K=K, dout=moe_hid_layer_len)

    w_slab, b_slab = pack_params(params, L=L, K=K)

    x = jax.random.randint(kx, (B, nfield), 0, nfeat, dtype=jnp.int32)
    sql = jax.random.randint(ks, (B, nfield), 0, col_cardinality_sum, dtype=jnp.int32)

    y = sams_forward(w_slab, b_slab, params["sql_emb"], params["data_emb"],
                     x, sql, cfg=cfg)
    y = jax.block_until_ready(y)
    assert y.shape == (B, 1) and y.dtype == jnp.float32

    y_ref = jax.block_until_ready(sams_reference(params, x, sql, L=L, K=K))
    # bf16 activation / gate casts on the MXU vs. the pure-f32 reference
    assert jnp.allclose(y, y_ref, rtol=3e-2, atol=2e-3), (y, y_ref)

    print("KERNEL_OK")
</pallas_src>

<mosaic_0001>
module attributes {stable_mosaic.version = 11 : i64} {
  func.func @_sams_fused_kernel(%arg0: memref<2x4xi32, #tpu.memory_space<smem>>, %arg1: memref<2x4xi32, #tpu.memory_space<smem>>, %arg2: memref<21x8xf32, #tpu.memory_space<vmem>>, %arg3: memref<16x8xf32, #tpu.memory_space<vmem>>, %arg4: memref<168x128xbf16, #tpu.memory_space<vmem>>, %arg5: memref<8x128xf32, #tpu.memory_space<vmem>>, %arg6: memref<2x1xf32, #tpu.memory_space<vmem>>) attributes {dimension_semantics = [], scalar_prefetch = 0 : i64, scratch_operands = 0 : i64, tpu.core_type = #tpu.core_type<tc>} {
    %c0 = arith.constant 0 : index
    %c0_0 = arith.constant 0 : index
    %0 = memref.load %arg0[%c0, %c0_0] : memref<2x4xi32, #tpu.memory_space<smem>>
    %1 = arith.index_cast %0 : i32 to index
    %c0_1 = arith.constant 0 : index
    %2 = vector.load %arg2[%1, %c0_1] : memref<21x8xf32, #tpu.memory_space<vmem>>, vector<1x8xf32>
    %c0_2 = arith.constant 0 : index
    %c1 = arith.constant 1 : index
    %3 = memref.load %arg0[%c0_2, %c1] : memref<2x4xi32, #tpu.memory_space<smem>>
    %4 = arith.index_cast %3 : i32 to index
    %c0_3 = arith.constant 0 : index
    %5 = vector.load %arg2[%4, %c0_3] : memref<21x8xf32, #tpu.memory_space<vmem>>, vector<1x8xf32>
    %c0_4 = arith.constant 0 : index
    %c2 = arith.constant 2 : index
    %6 = memref.load %arg0[%c0_4, %c2] : memref<2x4xi32, #tpu.memory_space<smem>>
    %7 = arith.index_cast %6 : i32 to index
    %c0_5 = arith.constant 0 : index
    %8 = vector.load %arg2[%7, %c0_5] : memref<21x8xf32, #tpu.memory_space<vmem>>, vector<1x8xf32>
    %c0_6 = arith.constant 0 : index
    %c3 = arith.constant 3 : index
    %9 = memref.load %arg0[%c0_6, %c3] : memref<2x4xi32, #tpu.memory_space<smem>>
    %10 = arith.index_cast %9 : i32 to index
    %c0_7 = arith.constant 0 : index
    %11 = vector.load %arg2[%10, %c0_7] : memref<21x8xf32, #tpu.memory_space<vmem>>, vector<1x8xf32>
    %12 = tpu.concatenate %2, %5, %8, %11 in 1 : vector<1x8xf32>, vector<1x8xf32>, vector<1x8xf32>, vector<1x8xf32> -> vector<1x32xf32>
    %c1_8 = arith.constant 1 : index
    %c0_9 = arith.constant 0 : index
    %13 = memref.load %arg0[%c1_8, %c0_9] : memref<2x4xi32, #tpu.memory_space<smem>>
    %14 = arith.index_cast %13 : i32 to index
    %c0_10 = arith.constant 0 : index
    %15 = vector.load %arg2[%14, %c0_10] : memref<21x8xf32, #tpu.memory_space<vmem>>, vector<1x8xf32>
    %c1_11 = arith.constant 1 : index
    %c1_12 = arith.constant 1 : index
    %16 = memref.load %arg0[%c1_11, %c1_12] : memref<2x4xi32, #tpu.memory_space<smem>>
    %17 = arith.index_cast %16 : i32 to index
    %c0_13 = arith.constant 0 : index
    %18 = vector.load %arg2[%17, %c0_13] : memref<21x8xf32, #tpu.memory_space<vmem>>, vector<1x8xf32>
    %c1_14 = arith.constant 1 : index
    %c2_15 = arith.constant 2 : index
    %19 = memref.load %arg0[%c1_14, %c2_15] : memref<2x4xi32, #tpu.memory_space<smem>>
    %20 = arith.index_cast %19 : i32 to index
    %c0_16 = arith.constant 0 : index
    %21 = vector.load %arg2[%20, %c0_16] : memref<21x8xf32, #tpu.memory_space<vmem>>, vector<1x8xf32>
    %c1_17 = arith.constant 1 : index
    %c3_18 = arith.constant 3 : index
    %22 = memref.load %arg0[%c1_17, %c3_18] : memref<2x4xi32, #tpu.memory_space<smem>>
    %23 = arith.index_cast %22 : i32 to index
    %c0_19 = arith.constant 0 : index
    %24 = vector.load %arg2[%23, %c0_19] : memref<21x8xf32, #tpu.memory_space<vmem>>, vector<1x8xf32>
    %25 = tpu.concatenate %15, %18, %21, %24 in 1 : vector<1x8xf32>, vector<1x8xf32>, vector<1x8xf32>, vector<1x8xf32> -> vector<1x32xf32>
    %26 = tpu.concatenate %12, %25 in 0 : vector<1x32xf32>, vector<1x32xf32> -> vector<2x32xf32>
    %c0_20 = arith.constant 0 : index
    %c0_21 = arith.constant 0 : index
    %27 = memref.load %arg1[%c0_20, %c0_21] : memref<2x4xi32, #tpu.memory_space<smem>>
    %28 = arith.index_cast %27 : i32 to index
    %c0_22 = arith.constant 0 : index
    %29 = vector.load %arg3[%28, %c0_22] : memref<16x8xf32, #tpu.memory_space<vmem>>, vector<1x8xf32>
    %c0_23 = arith.constant 0 : index
    %c1_24 = arith.constant 1 : index
    %30 = memref.load %arg1[%c0_23, %c1_24] : memref<2x4xi32, #tpu.memory_space<smem>>
    %31 = arith.index_cast %30 : i32 to index
    %c0_25 = arith.constant 0 : index
    %32 = vector.load %arg3[%31, %c0_25] : memref<16x8xf32, #tpu.memory_space<vmem>>, vector<1x8xf32>
    %c0_26 = arith.constant 0 : index
    %c2_27 = arith.constant 2 : index
    %33 = memref.load %arg1[%c0_26, %c2_27] : memref<2x4xi32, #tpu.memory_space<smem>>
    %34 = arith.index_cast %33 : i32 to index
    %c0_28 = arith.constant 0 : index
    %35 = vector.load %arg3[%34, %c0_28] : memref<16x8xf32, #tpu.memory_space<vmem>>, vector<1x8xf32>
    %c0_29 = arith.constant 0 : index
    %c3_30 = arith.constant 3 : index
    %36 = memref.load %arg1[%c0_29, %c3_30] : memref<2x4xi32, #tpu.memory_space<smem>>
    %37 = arith.index_cast %36 : i32 to index
    %c0_31 = arith.constant 0 : index
    %38 = vector.load %arg3[%37, %c0_31] : memref<16x8xf32, #tpu.memory_space<vmem>>, vector<1x8xf32>
    %39 = tpu.concatenate %29, %32, %35, %38 in 1 : vector<1x8xf32>, vector<1x8xf32>, vector<1x8xf32>, vector<1x8xf32> -> vector<1x32xf32>
    %c1_32 = arith.constant 1 : index
    %c0_33 = arith.constant 0 : index
    %40 = memref.load %arg1[%c1_32, %c0_33] : memref<2x4xi32, #tpu.memory_space<smem>>
    %41 = arith.index_cast %40 : i32 to index
    %c0_34 = arith.constant 0 : index
    %42 = vector.load %arg3[%41, %c0_34] : memref<16x8xf32, #tpu.memory_space<vmem>>, vector<1x8xf32>
    %c1_35 = arith.constant 1 : index
    %c1_36 = arith.constant 1 : index
    %43 = memref.load %arg1[%c1_35, %c1_36] : memref<2x4xi32, #tpu.memory_space<smem>>
    %44 = arith.index_cast %43 : i32 to index
    %c0_37 = arith.constant 0 : index
    %45 = vector.load %arg3[%44, %c0_37] : memref<16x8xf32, #tpu.memory_space<vmem>>, vector<1x8xf32>
    %c1_38 = arith.constant 1 : index
    %c2_39 = arith.constant 2 : index
    %46 = memref.load %arg1[%c1_38, %c2_39] : memref<2x4xi32, #tpu.memory_space<smem>>
    %47 = arith.index_cast %46 : i32 to index
    %c0_40 = arith.constant 0 : index
    %48 = vector.load %arg3[%47, %c0_40] : memref<16x8xf32, #tpu.memory_space<vmem>>, vector<1x8xf32>
    %c1_41 = arith.constant 1 : index
    %c3_42 = arith.constant 3 : index
    %49 = memref.load %arg1[%c1_41, %c3_42] : memref<2x4xi32, #tpu.memory_space<smem>>
    %50 = arith.index_cast %49 : i32 to index
    %c0_43 = arith.constant 0 : index
    %51 = vector.load %arg3[%50, %c0_43] : memref<16x8xf32, #tpu.memory_space<vmem>>, vector<1x8xf32>
    %52 = tpu.concatenate %42, %45, %48, %51 in 1 : vector<1x8xf32>, vector<1x8xf32>, vector<1x8xf32>, vector<1x8xf32> -> vector<1x32xf32>
    %53 = tpu.concatenate %39, %52 in 0 : vector<1x32xf32>, vector<1x32xf32> -> vector<2x32xf32>
    %c0_44 = arith.constant 0 : index
    %c0_45 = arith.constant 0 : index
    %54 = vector.load %arg4[%c0_44, %c0_45] : memref<168x128xbf16, #tpu.memory_space<vmem>>, vector<32x32xbf16>
    %55 = arith.truncf %26 : vector<2x32xf32> to vector<2x32xbf16>
    %cst = arith.constant dense<0.000000e+00> : vector<2x32xf32>
    %56 = tpu.matmul %55, %54, %cst {dimension_numbers = #tpu.dot_dimension_numbers<[1], [0], [0], [1], [0, 0, 1, 1], [], []>} : vector<2x32xbf16>, vector<32x32xbf16>, vector<2x32xf32> -> vector<2x32xf32>
    %c0_46 = arith.constant 0 : index
    %c0_47 = arith.constant 0 : index
    %57 = vector.load %arg5[%c0_46, %c0_47] : memref<8x128xf32, #tpu.memory_space<vmem>>, vector<1x32xf32>
    %58 = vector.broadcast %57 : vector<1x32xf32> to vector<2x32xf32>
    %59 = arith.addf %56, %58 : vector<2x32xf32>
    %cst_48 = arith.constant 0.000000e+00 : f32
    %60 = vector.broadcast %cst_48 : f32 to vector<2x32xf32>
    %61 = arith.maximumf %59, %60 : vector<2x32xf32>
    %c32 = arith.constant 32 : index
    %c0_49 = arith.constant 0 : index
    %62 = vector.load %arg4[%c32, %c0_49] : memref<168x128xbf16, #tpu.memory_space<vmem>>, vector<32x32xbf16>
    %63 = arith.truncf %61 : vector<2x32xf32> to vector<2x32xbf16>
    %cst_50 = arith.constant dense<0.000000e+00> : vector<2x32xf32>
    %64 = tpu.matmul %63, %62, %cst_50 {dimension_numbers = #tpu.dot_dimension_numbers<[1], [0], [0], [1], [0, 0, 1, 1], [], []>} : vector<2x32xbf16>, vector<32x32xbf16>, vector<2x32xf32> -> vector<2x32xf32>
    %c1_51 = arith.constant 1 : index
    %c0_52 = arith.constant 0 : index
    %65 = vector.load %arg5[%c1_51, %c0_52] : memref<8x128xf32, #tpu.memory_space<vmem>>, vector<1x32xf32>
    %66 = vector.broadcast %65 : vector<1x32xf32> to vector<2x32xf32>
    %67 = arith.addf %64, %66 : vector<2x32xf32>
    %cst_53 = arith.constant 0.000000e+00 : f32
    %68 = vector.broadcast %cst_53 : f32 to vector<2x32xf32>
    %69 = arith.maximumf %67, %68 : vector<2x32xf32>
    %c64 = arith.constant 64 : index
    %c0_54 = arith.constant 0 : index
    %70 = vector.load %arg4[%c64, %c0_54] : memref<168x128xbf16, #tpu.memory_space<vmem>>, vector<32x8xbf16>
    %71 = arith.truncf %69 : vector<2x32xf32> to vector<2x32xbf16>
    %cst_55 = arith.constant dense<0.000000e+00> : vector<2x8xf32>
    %72 = tpu.matmul %71, %70, %cst_55 {dimension_numbers = #tpu.dot_dimension_numbers<[1], [0], [0], [1], [0, 0, 1, 1], [], []>} : vector<2x32xbf16>, vector<32x8xbf16>, vector<2x8xf32> -> vector<2x8xf32>
    %c2_56 = arith.constant 2 : index
    %c0_57 = arith.constant 0 : index
    %73 = vector.load %arg5[%c2_56, %c0_57] : memref<8x128xf32, #tpu.memory_space<vmem>>, vector<1x8xf32>
    %74 = vector.broadcast %73 : vector<1x8xf32> to vector<2x8xf32>
    %75 = arith.addf %72, %74 : vector<2x8xf32>
    %c96 = arith.constant 96 : index
    %c0_58 = arith.constant 0 : index
    %76 = vector.load %arg4[%c96, %c0_58] : memref<168x128xbf16, #tpu.memory_space<vmem>>, vector<32x128xbf16>
    %c3_59 = arith.constant 3 : index
    %c0_60 = arith.constant 0 : index
    %77 = vector.load %arg5[%c3_59, %c0_60] : memref<8x128xf32, #tpu.memory_space<vmem>>, vector<1x128xf32>
    %78 = arith.truncf %53 : vector<2x32xf32> to vector<2x32xbf16>
    %cst_61 = arith.constant dense<0.000000e+00> : vector<2x128xf32>
    %79 = tpu.matmul %78, %76, %cst_61 {dimension_numbers = #tpu.dot_dimension_numbers<[1], [0], [0], [1], [0, 0, 1, 1], [], []>} : vector<2x32xbf16>, vector<32x128xbf16>, vector<2x128xf32> -> vector<2x128xf32>
    %80 = vector.broadcast %77 : vector<1x128xf32> to vector<2x128xf32>
    %81 = arith.addf %79, %80 : vector<2x128xf32>
    %cst_62 = arith.constant 0.000000e+00 : f32
    %82 = vector.broadcast %cst_62 : f32 to vector<2x128xf32>
    %83 = arith.maximumf %81, %82 : vector<2x128xf32>
    %84 = vector.extract_strided_slice %75 {offsets = [0, 0], sizes = [2, 4], strides = [1, 1]} : vector<2x8xf32> to vector<2x4xf32>
    %cst_63 = arith.constant dense<0xFF800000> : vector<2xf32>
    %85 = vector.multi_reduction <maximumf>, %84, %cst_63 [1] : vector<2x4xf32> to vector<2xf32>
    %86 = vector.shape_cast %85 : vector<2xf32> to vector<2x1xf32>
    %87 = vector.broadcast %86 : vector<2x1xf32> to vector<2x4xf32>
    %88 = arith.subf %84, %87 : vector<2x4xf32>
    %89 = math.exp %88 : vector<2x4xf32>
    %cst_64 = arith.constant dense<0.000000e+00> : vector<2xf32>
    %90 = vector.multi_reduction <add>, %89, %cst_64 [1] : vector<2x4xf32> to vector<2xf32>
    %91 = vector.shape_cast %90 : vector<2xf32> to vector<2x1xf32>
    %92 = vector.broadcast %91 : vector<2x1xf32> to vector<2x4xf32>
    %93 = arith.divf %89, %92 : vector<2x4xf32>
    %c160 = arith.constant 160 : index
    %c0_65 = arith.constant 0 : index
    %94 = vector.load %arg4[%c160, %c0_65] : memref<168x128xbf16, #tpu.memory_space<vmem>>, vector<4x128xbf16>
    %95 = arith.truncf %93 : vector<2x4xf32> to vector<2x4xbf16>
    %cst_66 = arith.constant dense<0.000000e+00> : vector<2x128xf32>
    %96 = tpu.matmul %95, %94, %cst_66 {dimension_numbers = #tpu.dot_dimension_numbers<[1], [0], [0], [1], [0, 0, 1, 1], [], []>} : vector<2x4xbf16>, vector<4x128xbf16>, vector<2x128xf32> -> vector<2x128xf32>
    %97 = arith.mulf %96, %83 : vector<2x128xf32>
    %98 = vector.extract_strided_slice %97 {offsets = [0, 0], sizes = [2, 32], strides = [1, 1]} : vector<2x128xf32> to vector<2x32xf32>
    %99 = vector.extract_strided_slice %97 {offsets = [0, 32], sizes = [2, 32], strides = [1, 1]} : vector<2x128xf32> to vector<2x32xf32>
    %100 = arith.addf %98, %99 : vector<2x32xf32>
    %101 = vector.extract_strided_slice %97 {offsets = [0, 64], sizes = [2, 32], strides = [1, 1]} : vector<2x128xf32> to vector<2x32xf32>
    %102 = arith.addf %100, %101 : vector<2x32xf32>
    %103 = vector.extract_strided_slice %97 {offsets = [0, 96], sizes = [2, 32], strides = [1, 1]} : vector<2x128xf32> to vector<2x32xf32>
    %104 = arith.addf %102, %103 : vector<2x32xf32>
    %c128 = arith.constant 128 : index
    %c0_67 = arith.constant 0 : index
    %105 = vector.load %arg4[%c128, %c0_67] : memref<168x128xbf16, #tpu.memory_space<vmem>>, vector<32x128xbf16>
    %c4 = arith.constant 4 : index
    %c0_68 = arith.constant 0 : index
    %106 = vector.load %arg5[%c4, %c0_68] : memref<8x128xf32, #tpu.memory_space<vmem>>, vector<1x128xf32>
    %107 = arith.truncf %104 : vector<2x32xf32> to vector<2x32xbf16>
    %cst_69 = arith.constant dense<0.000000e+00> : vector<2x128xf32>
    %108 = tpu.matmul %107, %105, %cst_69 {dimension_numbers = #tpu.dot_dimension_numbers<[1], [0], [0], [1], [0, 0, 1, 1], [], []>} : vector<2x32xbf16>, vector<32x128xbf16>, vector<2x128xf32> -> vector<2x128xf32>
    %109 = vector.broadcast %106 : vector<1x128xf32> to vector<2x128xf32>
    %110 = arith.addf %108, %109 : vector<2x128xf32>
    %cst_70 = arith.constant 0.000000e+00 : f32
    %111 = vector.broadcast %cst_70 : f32 to vector<2x128xf32>
    %112 = arith.maximumf %110, %111 : vector<2x128xf32>
    %113 = vector.extract_strided_slice %75 {offsets = [0, 4], sizes = [2, 4], strides = [1, 1]} : vector<2x8xf32> to vector<2x4xf32>
    %cst_71 = arith.constant dense<0xFF800000> : vector<2xf32>
    %114 = vector.multi_reduction <maximumf>, %113, %cst_71 [1] : vector<2x4xf32> to vector<2xf32>
    %115 = vector.shape_cast %114 : vector<2xf32> to vector<2x1xf32>
    %116 = vector.broadcast %115 : vector<2x1xf32> to vector<2x4xf32>
    %117 = arith.subf %113, %116 : vector<2x4xf32>
    %118 = math.exp %117 : vector<2x4xf32>
    %cst_72 = arith.constant dense<0.000000e+00> : vector<2xf32>
    %119 = vector.multi_reduction <add>, %118, %cst_72 [1] : vector<2x4xf32> to vector<2xf32>
    %120 = vector.shape_cast %119 : vector<2xf32> to vector<2x1xf32>
    %121 = vector.broadcast %120 : vector<2x1xf32> to vector<2x4xf32>
    %122 = arith.divf %118, %121 : vector<2x4xf32>
    %c160_73 = arith.constant 160 : index
    %c0_74 = arith.constant 0 : index
    %123 = vector.load %arg4[%c160_73, %c0_74] : memref<168x128xbf16, #tpu.memory_space<vmem>>, vector<4x128xbf16>
    %124 = arith.truncf %122 : vector<2x4xf32> to vector<2x4xbf16>
    %cst_75 = arith.constant dense<0.000000e+00> : vector<2x128xf32>
    %125 = tpu.matmul %124, %123, %cst_75 {dimension_numbers = #tpu.dot_dimension_numbers<[1], [0], [0], [1], [0, 0, 1, 1], [], []>} : vector<2x4xbf16>, vector<4x128xbf16>, vector<2x128xf32> -> vector<2x128xf32>
    %126 = arith.mulf %125, %112 : vector<2x128xf32>
    %127 = vector.extract_strided_slice %126 {offsets = [0, 0], sizes = [2, 32], strides = [1, 1]} : vector<2x128xf32> to vector<2x32xf32>
    %128 = vector.extract_strided_slice %126 {offsets = [0, 32], sizes = [2, 32], strides = [1, 1]} : vector<2x128xf32> to vector<2x32xf32>
    %129 = arith.addf %127, %128 : vector<2x32xf32>
    %130 = vector.extract_strided_slice %126 {offsets = [0, 64], sizes = [2, 32], strides = [1, 1]} : vector<2x128xf32> to vector<2x32xf32>
    %131 = arith.addf %129, %130 : vector<2x32xf32>
    %132 = vector.extract_strided_slice %126 {offsets = [0, 96], sizes = [2, 32], strides = [1, 1]} : vector<2x128xf32> to vector<2x32xf32>
    %133 = arith.addf %131, %132 : vector<2x32xf32>
    %c5 = arith.constant 5 : index
    %c0_76 = arith.constant 0 : index
    %134 = vector.load %arg5[%c5, %c0_76] : memref<8x128xf32, #tpu.memory_space<vmem>>, vector<1x32xf32>
    %c6 = arith.constant 6 : index
    %c0_77 = arith.constant 0 : index
    %135 = vector.load %arg5[%c6, %c0_77] : memref<8x128xf32, #tpu.memory_space<vmem>>, vector<1x1xf32>
    %136 = vector.broadcast %134 : vector<1x32xf32> to vector<2x32xf32>
    %137 = arith.mulf %133, %136 : vector<2x32xf32>
    %cst_78 = arith.constant dense<0.000000e+00> : vector<2xf32>
    %138 = vector.multi_reduction <add>, %137, %cst_78 [1] : vector<2x32xf32> to vector<2xf32>
    %139 = vector.shape_cast %138 : vector<2xf32> to vector<2x1xf32>
    %140 = vector.broadcast %135 : vector<1x1xf32> to vector<2x1xf32>
    %141 = arith.addf %139, %140 : vector<2x1xf32>
    %c0_79 = arith.constant 0 : index
    %c0_80 = arith.constant 0 : index
    %142 = vector.load %arg6[%c0_79, %c0_80] : memref<2x1xf32, #tpu.memory_space<vmem>>, vector<2x1xf32>
    tpu.vector_store %arg6[%c0_79, %c0_80], %141 {strides = array<i32>} : memref<2x1xf32, #tpu.memory_space<vmem>>, vector<2x1xf32>,
    return
  }
}

</mosaic_0001>

<bundles_post_ra>
// kernel: tpu_custom_call.1
= control target key start
LH: loop header
LB: loop body
LE: loop exit
PB: predicated region body
PF: predicated region fallthrough
CT: control target
= control target key end

     0   :  { %11 = vsyncpa [#allocation4], 0  ;;  %s877_s0 = inlined_call_operand.vmem [shape: s32[2,4], index: 0, kind: input, shape index: {}]   ;;  %s878_s1 = inlined_call_operand.vmem [shape: s32[2,4], index: 1, kind: input, shape index: {}]   ;;  %s879_s2 = inlined_call_operand.vmem [shape: f32[21,8], index: 2, kind: input, shape index: {}]   ;;  %s880_s3 = inlined_call_operand.vmem [shape: f32[16,8], index: 3, kind: input, shape index: {}]   ;;  %s881_s4 = inlined_call_operand.hbm [shape: bf16[168,128], index: 4, kind: input, shape index: {}]   ;;  %s882_s5 = inlined_call_operand.vmem [shape: f32[8,128], index: 5, kind: input, shape index: {}]   ;;  %s883_s6 = inlined_call_operand.vmem [shape: f32[2,1], index: 6, kind: output, shape index: {}]  }
   0x1   :  { %12 = vsyncpa [#allocation6], 0  ;;  %s19_s23 = sshll.u32 %s877_s0, 4  ;;  %s20_s23 = int_to_ptr.vmem [resolvable:$true] %s19_s23 }
   0x2   :  { %13 = vsyncpa [#allocation3], 0  ;;  %s28_s26 = sshll.u32 %s878_s1, 4  ;;  %s706_s27 = smov [#allocation2]   ;;  %s29_s26 = int_to_ptr.vmem [resolvable:$true] %s28_s26 }
   0x3   :  { %22 = dma.vmem_to_smem %s20_s23, 32, %s706_s27, [#allocation4]  }
   0x4   :  { %s707_s28 = smov [#allocation5]   ;;  %s40_s7 = sshll.u32 %s881_s4, 4  ;;  %s41_s7 = int_to_ptr.hbm [resolvable:$true] %s40_s7 }
   0x5   :  { %31 = dma.vmem_to_smem %s29_s26, 32, %s707_s28, [#allocation6]  }
   0x6   :  { %s708_s8 = smov [#allocation7]   ;;  %s709_s0 = smov 64  }
   0x7   :  { %s42_s9 = sshll.u32 %s708_s8, 4  ;;  %s710_s10 = smov 4   ;;  %s43_s9 = int_to_ptr.vmem [resolvable:$true] %s42_s9 }
   0x8   :  { %48 = dma.hbm_to_vmem [thread:$0]  %s41_s7, 1344, %s43_s9, [#allocation3], %s709_s0, %s709_s0, %s710_s10  }
   0x9   :  { %700 = dma.done.wait [#allocation4], 32  }
   0xa   :  { %701 = vsyncadd [#allocation4], 4294967264 }
   0xb   :  { %702 = dma.done.wait [#allocation6], 32  }
   0xc   :  { %703 = vsyncadd [#allocation6], 4294967264 }
   0xd   :  { %704 = dma.done.wait [#allocation3], 1344  }
   0xe   :  { %705 = vsyncadd [#allocation3], 4294965952 }
   0xf   :  { %63 = sfence }
  0x10   :  { %s525_s1 = sld [smem:[#allocation2 + $0x1]]  ;;  %s711_s30 = smov 8   ;;  %v587_v9 = vld [vmem:[#allocation7 + $0x8] sm:$0xff]  ;;  %v586_v10 = vld [vmem:[#allocation7] sm:$0xff]  ;;  %vm89_vm0 = vcmask 64512   ;;  %vm91_vm1 = vcmask 130048  }
  0x11   :  { %s529_s11 = sld [smem:[#allocation2 + $0x81]]  ;;  %s712_s10 = smov 24   ;;  %214 = vmatpush.bf16.msra.mxu0 %v587_v9  ;;  %vm93_vm2 = vcmask 195584   ;;  %vm125_vm3 = vcmask 1040384   ;;  %vm204_vm4 = vcmask 261120   ;;  %v589_v31 = vld [vmem:[#allocation7 + $0x18] sm:$0xff] }
  0x12   :  { %s526_s12 = sld [smem:[#allocation2 + $0x2]]  ;;  %250 = vmatpush.bf16.msra.mxu1 %v589_v31  ;;  %v588_v32 = vld [vmem:[#allocation7 + $0x10] sm:$0xff]  ;;  %v637_v33 = vld [vmem:[%s882_s5] ss:$0 sm:$0xff]  ;;  %v591_v39 = vld [vmem:[#allocation7 + $0x28] sm:$0xff]  ;;  %vm427_vm5 = vcmask 58400  }
  0x13   :  { %s530_s4 = sld [smem:[#allocation2 + $0x82]]  ;;  %286 = vmatpush.bf16.msra.mxu2 %v591_v39  ;;  %v590_v40 = vld [vmem:[#allocation7 + $0x20] sm:$0xff]  ;;  %vm329_vm6 = vcmask 25600   ;;  %v593_v9 = vld [vmem:[#allocation7 + $0x38] sm:$0xff]  ;;  %vm360_vm7 = vcmask 1041408   ;;  %vm356_vm12 = vcmask 31744  }
  0x14   :  { %s527_s13 = sld [smem:[#allocation2 + $0x3]]  ;;  %v638_v47 = vld [vmem:[%s882_s5 + $0x1] ss:$0 sm:$0xff]  ;;  %v639_v53 = vld [vmem:[%s882_s5 + $0x2] ss:$0 sm:$0xff]  ;;  %321 = vmatpush.bf16.msra.mxu3 %v593_v9  ;;  %s715_s7 = smov 96  }
  0x15   :  { %s531_s14 = sld [smem:[#allocation2 + $0x83]]  ;;  %215 = vmatpush.bf16.msra.mxu0 %v586_v10  ;;  %v354_v10 = vld [vmem:[#allocation7 + $0x50] sm:$0x3] }
  0x16   :  { %s69_s17 = scalar_lea.vmem %s879_s2, %s525_s1  ;;  %s713_s1 = smov 16   ;;  %251 = vmatpush.bf16.msra.mxu1 %v588_v32 }
  0x17   :  { %v70_v0 = vld [vmem:[%s69_s17] sm:$0x1]  ;;  %s99_s20 = scalar_lea.vmem %s879_s2, %s529_s11  ;;  %s528_s11 = sld [smem:[#allocation2 + $0x80]]  ;;  %287 = vmatpush.bf16.msra.mxu2 %v590_v40 }
  0x18   :  { %v100_v1 = vld [vmem:[%s99_s20] sm:$0x1]  ;;  %s72_s23 = scalar_lea.vmem %s879_s2, %s526_s12  ;;  %s65_s12 = sld [smem:[#allocation2]] }
  0x19   :  { %v607_v2 = vpack.i.bf16 %v70_v0, %v100_v1  ;;  %s102_s26 = scalar_lea.vmem %s879_s2, %s530_s4  ;;  %v73_v4 = vld [vmem:[%s72_s23] sm:$0x1]  ;;  %s533_s19 = sld [smem:[#allocation5 + $0x2]] }
  0x1a   :  { %s75_s29 = scalar_lea.vmem %s879_s2, %s527_s13  ;;  %v103_v5 = vld [vmem:[%s102_s26] sm:$0x1]  ;;  %s537_s20 = sld [smem:[#allocation5 + $0x82]] }
  0x1b   :  { %608 = vrot.lane.b32.xlu0 %v607_v2, %s711_s30  ;;  %v76_v3 = vld [vmem:[%s75_s29] sm:$0x1]  ;;  %s105_s9 = scalar_lea.vmem %s879_s2, %s531_s14  ;;  %v612_v8 = vpack.i.bf16 %v73_v4, %v103_v5  ;;  %s534_s21 = sld [smem:[#allocation5 + $0x3]] }
  0x1c   :  { %v106_v6 = vld [vmem:[%s105_s9] sm:$0x1]  ;;  %s538_s22 = sld [smem:[#allocation5 + $0x83]] }
  0x1d   :  { %v617_v7 = vpack.i.bf16 %v76_v3, %v106_v6  ;;  %s96_s14 = scalar_lea.vmem %s879_s2, %s528_s11  ;;  %s535_s23 = sld [smem:[#allocation5 + $0x80]] }
  0x1e   :  { %s66_s17 = scalar_lea.vmem %s879_s2, %s65_s12  ;;  %v97_v15 = vld [vmem:[%s96_s14] sm:$0x1] }
  0x1f   :  { %618 = vrot.lane.b32.xlu1 %v617_v7, %s712_s10  ;;  %v67_v16 = vld [vmem:[%s66_s17] sm:$0x1]  ;;  %s134_s25 = scalar_lea.vmem %s880_s3, %s533_s19 }
  0x20   :  { %s161_s28 = scalar_lea.vmem %s880_s3, %s537_s20  ;;  %v135_v41 = vld [vmem:[%s134_s25] sm:$0x1] }
  0x21   :  { %v162_v42 = vld [vmem:[%s161_s28] sm:$0x1]  ;;  %s137_s8 = scalar_lea.vmem %s880_s3, %s534_s21  ;;  %s714_s21 = smov 124  }
  0x22   :  { %v627_v43 = vpack.i.bf16 %v135_v41, %v162_v42  ;;  %s164_s12 = scalar_lea.vmem %s880_s3, %s538_s22  ;;  %v138_v44 = vld [vmem:[%s137_s8] sm:$0x1]  ;;  %s127_s22 = sld [smem:[#allocation5]] }
  0x23   :  { %613 = vrot.lane.b32.xlu0 %v612_v8, %s713_s1  ;;  %v165_v45 = vld [vmem:[%s164_s12] sm:$0x1]  ;;  %s155_s28 = scalar_lea.vmem %s880_s3, %s535_s23  ;;  %s716_s8 = smov 32  }
  0x24   :  { %v632_v46 = vpack.i.bf16 %v138_v44, %v165_v45 }
  0x28   :  { %s128_s25 = scalar_lea.vmem %s880_s3, %s127_s22 }
  0x2b   :  { %628 = vrot.lane.b32.xlu0 %v627_v43, %s713_s1  ;;  %s536_s1 = sld [smem:[#allocation5 + $0x81]] }
  0x31   :  { %s158_s20 = scalar_lea.vmem %s880_s3, %s536_s1 }
  0x32   :  { %v159_v5 = vld [vmem:[%s158_s20] sm:$0x1] }
  0x33   :  { %633 = vrot.lane.b32.xlu0 %v632_v46, %s712_s10  ;;  %s532_s10 = sld [smem:[#allocation5 + $0x1]] }
  0x39   :  { %s131_s2 = scalar_lea.vmem %s880_s3, %s532_s10 }
  0x3a   :  { %v132_v4 = vld [vmem:[%s131_s2] sm:$0x1] }
  0x3b   :  { %v622_v6 = vpack.i.bf16 %v132_v4, %v159_v5  ;;  %v594_v4 = vld [vmem:[#allocation7 + $0x40] sm:$0xff] }
  0x8d   :  { %v609_v11 = vpop.permute.xlu0 %608 }
  0x8e   :  { %v611_v13 = vunpack.i.h.bf16 %v609_v11  ;;  %v610_v14 = vunpack.i.l.bf16 %v609_v11  ;;  %v592_v11 = vld [vmem:[#allocation7 + $0x30] sm:$0xff] }
  0x8f   :  { %322 = vmatpush.bf16.msra.mxu3 %v592_v11 }
  0x90   :  { %v90_v21 = vsel %vm89_vm0, %v67_v16, %v611_v13  ;;  %v119_v22 = vsel %vm89_vm0, %v97_v15, %v610_v14  ;;  %v129_v16 = vld [vmem:[%s128_s25] sm:$0x1] }
  0x91   :  { %v619_v12 = vpop.permute.xlu1 %618 }
  0x92   :  { %v620_v18 = vunpack.i.l.bf16 %v619_v12  ;;  %v621_v23 = vunpack.i.h.bf16 %v619_v12  ;;  %v362_v12 = vsel %vm360_vm7, %v354_v10, 0 }
  0x93   :  { %371 = vmatpush.bf16.msrb.mxu0 %v362_v12  ;;  %470 = vmatpush.bf16.msrb.mxu2 %v362_v12 }
  0x95   :  { %v614_v17 = vpop.permute.xlu0 %613 }
  0x96   :  { %v616_v19 = vunpack.i.h.bf16 %v614_v17  ;;  %v615_v20 = vunpack.i.l.bf16 %v614_v17  ;;  %v156_v17 = vld [vmem:[%s155_s28] sm:$0x1] }
  0x98   :  { %v92_v24 = vsel %vm91_vm1, %v90_v21, %v616_v19  ;;  %v120_v25 = vsel %vm91_vm1, %v119_v22, %v615_v20 }
  0x99   :  { %v121_v26 = vsel %vm93_vm2, %v120_v25, %v620_v18  ;;  %v94_v28 = vsel %vm93_vm2, %v92_v24, %v621_v23 }
  0x9a   :  { %v123_v27 = vrot.slane %v121_v26, 7 }
  0x9c   :  { %v126_v29 = vsel %vm125_vm3, %v94_v28, %v123_v27 }
  0x9d   :  { %v189_v30 = vpack.c.bf16 %v126_v29, %v126_v29  ;;  %v629_v62 = vpop.permute.xlu0 %628 }
  0x9e   :  { %v631_v21 = vunpack.i.h.bf16 %v629_v62  ;;  %v630_v22 = vunpack.i.l.bf16 %v629_v62 }
  0x9f   :  { %547 = vmatmul.msk.bf16.vlgmr.msra.gmra.mxu0 %vm204_vm4, %v189_v30 }
  0xa5   :  { %v634_v1 = vpop.permute.xlu0 %633 }
  0xa6   :  { %v635_v23 = vunpack.i.l.bf16 %v634_v1  ;;  %v636_v32 = vunpack.i.h.bf16 %v634_v1 }
 0x11c   :  { %v217_v34 = vpop.f32.mrf.mxu0 }
 0x11d   :  { %v218_v35 = vadd.f32 %v637_v33, %v217_v34 }
 0x11f   :  { %v221_v36 = vmax.f32 %v218_v35, 0.0 }
 0x121   :  { %v226_v37 = vpack.c.bf16 %v221_v36, %v221_v36 }
 0x123   :  { %556 = vmatmul.msk.bf16.vlgmr.msra.gmra.mxu1 %vm204_vm4, %v226_v37 }
 0x124   :  { %v219_v38 = vpop.f32.mrf.mxu0 }
 0x1a0   :  { %v253_v48 = vpop.f32.mrf.mxu1 }
 0x1a1   :  { %v254_v49 = vadd.f32 %v638_v47, %v253_v48 }
 0x1a3   :  { %v257_v50 = vmax.f32 %v254_v49, 0.0 }
 0x1a5   :  { %v262_v51 = vpack.c.bf16 %v257_v50, %v257_v50 }
 0x1a7   :  { %565 = vmatmul.msk.bf16.vlgmr.msra.gmra.mxu2 %vm204_vm4, %v262_v51 }
 0x1a8   :  { %v255_v52 = vpop.f32.mrf.mxu1 }
 0x22a   :  { %v289_v54 = vpop.f32.mrf.mxu2 }
 0x22b   :  { %v290_v55 = vadd.f32 %v639_v53, %v289_v54  ;;  %v640_v54 = vld [vmem:[%s882_s5 + $0x3] ss:$0 sm:$0xff] }
 0x22d   :  { %v428_v56 = vsel %vm427_vm5, %v290_v55, -inf  ;;  %v330_v57 = vsel %vm329_vm6, %v290_v55, -inf }
 0x22e   :  { %429 = vmax.xlane.f32.xlu0 %v428_v56  ;;  %331 = vmax.xlane.f32.xlu1 %v330_v57 }
 0x232   :  { %v291_v58 = vpop.f32.mrf.mxu2 }
 0x2a1   :  { %v332_v59 = vpop.xlane.xlu1 %331  ;;  %v430_v2 = vpop.xlane.xlu0 %429 }
 0x2a2   :  { %v333_v60 = vsub.f32 %v290_v55, %v332_v59  ;;  %v431_v3 = vsub.f32 %v290_v55, %v430_v2 }
 0x2a4   :  { %v334_v61 = vmul.f32 1.442695, %v333_v60  ;;  %v432_v7 = vmul.f32 1.442695, %v431_v3  ;;  %v595_v3 = vld [vmem:[#allocation7 + $0x48] sm:$0xff] }
 0x2a5   :  { %419 = vmatpush.bf16.msrb.mxu1 %v595_v3 }
 0x2a6   :  { %644 = vpow2.f32 %v334_v61 }
 0x2a7   :  { %646 = vpow2.f32 %v432_v7 }
 0x2a9   :  { %420 = vmatpush.bf16.msrb.mxu1 %v594_v4 }
 0x2ac   :  { %v824_v63 = vpop.eup %644 }
 0x2ad   :  { %v336_v0 = vsel %vm329_vm6, %v824_v63, 0.0  ;;  %v835_v8 = vpop.eup %646 }
 0x2ae   :  { %337 = vadd.xlane.f32.xlu2 %v336_v0 }
 0x2c6   :  { %623 = vrot.lane.b32.xlu2 %v622_v6, %s711_s30 }
 0x2ce   :  { %435 = vrot.lane.b32.xlu2 %v835_v8, %s714_s21 }
 0x321   :  { %v338_v13 = vpop.xlane.xlu2 %337 }
 0x322   :  { %648 = vrcp.f32 %v338_v13  ;;  %v348_v25 = vand.u32 2147483647, %v338_v13  ;;  %v350_v26 = vand.u32 2147483648, %v338_v13  ;;  %vm344_vm9 = vweird.f32 %v338_v13 }
 0x324   :  { %v351_v36 = vor.u32 1.1754944e-38, %v350_v26  ;;  %vm349_vm11 = vcmp.eq.f32.partialorder %v348_v25, 8.507059e+37  ;;  %v642_v25 = vld [vmem:[%s882_s5 + $0x5] ss:$0 sm:$0xff] }
 0x328   :  { %v649_v14 = vpop.eup %648 }
 0x329   :  { %v340_v15 = vmul.f32 %v649_v14, %v338_v13  ;;  %v624_v18 = vpop.permute.xlu2 %623  ;;  %vm345_vm8 = vweird.f32 %v649_v14 }
 0x32a   :  { %v626_v19 = vunpack.i.h.bf16 %v624_v18  ;;  %v625_v20 = vunpack.i.l.bf16 %v624_v18  ;;  %vm346_vm10 = vmor %vm344_vm9, %vm345_vm8 }
 0x32b   :  { %v341_v24 = vsub.f32 1.0, %v340_v15  ;;  %v641_v15 = vld [vmem:[%s882_s5 + $0x4] ss:$0 sm:$0xff] }
 0x32c   :  { %v151_v27 = vsel %vm89_vm0, %v129_v16, %v626_v19  ;;  %v178_v28 = vsel %vm89_vm0, %v156_v17, %v625_v20 }
 0x32d   :  { %v342_v29 = vmul.f32 %v649_v14, %v341_v24  ;;  %v152_v30 = vsel %vm91_vm1, %v151_v27, %v631_v21  ;;  %v179_v31 = vsel %vm91_vm1, %v178_v28, %v630_v22  ;;  %vm494_vm1 = vcmask 254976  }
 0x32e   :  { %v180_v33 = vsel %vm93_vm2, %v179_v31, %v635_v23  ;;  %v153_v37 = vsel %vm93_vm2, %v152_v30, %v636_v32  ;;  %v643_v30 = vld [vmem:[%s882_s5 + $0x6] ss:$0 sm:$0xff]  ;;  %vm500_vm2 = vcmask 1024  }
 0x32f   :  { %v343_v34 = vadd.f32 %v649_v14, %v342_v29  ;;  %v182_v35 = vrot.slane %v180_v33, 7 }
 0x331   :  { %v436_v38 = vpop.permute.xlu2 %435  ;;  %v184_v39 = vsel %vm125_vm3, %v153_v37, %v182_v35  ;;  %v347_v40 = vsel %vm346_vm10, %v649_v14, %v343_v34 }
 0x332   :  { %v438_v41 = vsel %vm329_vm6, %v436_v38, 0.0  ;;  %v298_v42 = vpack.c.bf16 %v184_v39, %v184_v39  ;;  %v352_v43 = vsel %vm349_vm11, %v351_v36, %v347_v40 }
 0x333   :  { %439 = vadd.xlane.f32.xlu2 %v438_v41  ;;  %v353_v44 = vmul.f32 %v824_v63, %v352_v43 }
 0x334   :  { %574 = vmatmul.msk.bf16.vlgmr.msra.gmra.mxu3 %vm204_vm4, %v298_v42 }
 0x335   :  { %v355_v45 = vpack.c.bf16 %v353_v44, %v353_v44 }
 0x337   :  { %575 = vmatmul.msk.bf16.vlgmr.msrb.gmra.mxu0 %vm356_vm12, %v355_v45 }
 0x3a6   :  { %v440_v46 = vpop.xlane.xlu2 %439 }
 0x3a7   :  { %650 = vrcp.f32 %v440_v46  ;;  %v452_v50 = vand.u32 2147483648, %v440_v46  ;;  %v450_v52 = vand.u32 2147483647, %v440_v46  ;;  %vm446_vm14 = vweird.f32 %v440_v46 }
 0x3a9   :  { %v453_v56 = vor.u32 1.1754944e-38, %v452_v50  ;;  %vm451_vm0 = vcmp.eq.f32.partialorder %v450_v52, 8.507059e+37 }
 0x3ad   :  { %v651_v47 = vpop.eup %650 }
 0x3ae   :  { %v442_v48 = vmul.f32 %v651_v47, %v440_v46  ;;  %vm447_vm13 = vweird.f32 %v651_v47 }
 0x3af   :  { %vm448_vm15 = vmor %vm446_vm14, %vm447_vm13 }
 0x3b0   :  { %v443_v49 = vsub.f32 1.0, %v442_v48 }
 0x3b2   :  { %v444_v51 = vmul.f32 %v651_v47, %v443_v49 }
 0x3b4   :  { %v373_v53 = vpop.f32.mrf.mxu0  ;;  %v445_v55 = vadd.f32 %v651_v47, %v444_v51 }
 0x3b6   :  { %v449_v57 = vsel %vm448_vm15, %v651_v47, %v445_v55 }
 0x3b7   :  { %v324_v58 = vpop.f32.mrf.mxu3  ;;  %v454_v59 = vsel %vm451_vm0, %v453_v56, %v449_v57 }
 0x3b8   :  { %v325_v60 = vadd.f32 %v640_v54, %v324_v58  ;;  %v455_v61 = vmul.f32 %v835_v8, %v454_v59 }
 0x3ba   :  { %v328_v62 = vmax.f32 %v325_v60, 0.0  ;;  %v456_v63 = vpack.c.bf16 %v455_v61, %v455_v61 }
 0x3bc   :  { %v377_v0 = vmul.f32 %v373_v53, %v328_v62  ;;  %v375_v1 = vpop.f32.mrf.mxu0  ;;  %458 = vrot.lane.b32.xlu2 %v456_v63, %s714_s21 }
 0x3be   :  { %383 = vrot.lane.b32.xlu0 %v377_v0, %s709_s0  ;;  %379 = vrot.lane.b32.xlu1 %v377_v0, %s715_s7 }
 0x3bf   :  { %v326_v2 = vpop.f32.mrf.mxu3 }
 0x3c6   :  { %387 = vrot.lane.b32.xlu1 %v377_v0, %s716_s8 }
 0x416   :  { %v459_v5 = vpop.permute.xlu2 %458 }
 0x417   :  { %585 = vmatmul.msk.bf16.vlgmr.msrb.gmra.mxu2 %vm356_vm12, %v459_v5 }
 0x430   :  { %v380_v6 = vpop.permute.xlu1 %379  ;;  %v384_v8 = vpop.permute.xlu0 %383 }
 0x431   :  { %v382_v7 = vadd.f32 %v380_v6, %v377_v0 }
 0x433   :  { %v386_v9 = vadd.f32 %v384_v8, %v382_v7 }
 0x438   :  { %v388_v10 = vpop.permute.xlu1 %387 }
 0x439   :  { %v390_v11 = vadd.f32 %v388_v10, %v386_v9 }
 0x43b   :  { %v396_v12 = vpack.c.bf16 %v390_v11, %v390_v11 }
 0x43d   :  { %584 = vmatmul.msk.bf16.vlgmr.msrb.gmra.mxu1 %vm204_vm4, %v396_v12 }
 0x49a   :  { %v472_v13 = vpop.f32.mrf.mxu2 }
 0x4a2   :  { %v474_v14 = vpop.f32.mrf.mxu2 }
 0x4ba   :  { %v422_v16 = vpop.f32.mrf.mxu1 }
 0x4bb   :  { %v423_v17 = vadd.f32 %v641_v15, %v422_v16 }
 0x4bd   :  { %v426_v18 = vmax.f32 %v423_v17, 0.0 }
 0x4bf   :  { %v476_v19 = vmul.f32 %v472_v13, %v426_v18 }
 0x4c1   :  { %486 = vrot.lane.b32.xlu0 %v476_v19, %s716_s8  ;;  %478 = vrot.lane.b32.xlu1 %v476_v19, %s715_s7 }
 0x4c2   :  { %v424_v20 = vpop.f32.mrf.mxu1 }
 0x4c9   :  { %482 = vrot.lane.b32.xlu1 %v476_v19, %s709_s0 }
 0x533   :  { %v479_v21 = vpop.permute.xlu1 %478  ;;  %v487_v26 = vpop.permute.xlu0 %486 }
 0x534   :  { %v481_v22 = vadd.f32 %v479_v21, %v476_v19 }
 0x53b   :  { %v483_v23 = vpop.permute.xlu1 %482 }
 0x53c   :  { %v485_v24 = vadd.f32 %v483_v23, %v481_v22 }
 0x53e   :  { %v489_v27 = vadd.f32 %v487_v26, %v485_v24 }
 0x540   :  { %v493_v28 = vmul.f32 %v642_v25, %v489_v27 }
 0x542   :  { %v495_v29 = vsel %vm494_vm1, %v493_v28, 0.0 }
 0x543   :  { %496 = vadd.xlane.f32.xlu1 %v495_v29 }
 0x5b6   :  { %v497_v31 = vpop.xlane.xlu1 %496 }
 0x5b7   :  { %v499_v32 = vadd.f32 %v643_v30, %v497_v31 }
 0x5b9   :  { %501 = vst.msk [vmem:[%s883_s6] sm:$0x3] %vm500_vm2, %v499_v32 }
 0x5ba   :  { %506 = vsyncpa [#allocation3], 1 }
 0x5bb   :  { %507 = vsyncpa [#allocation4], 1 }
 0x5bc   :  { %508 = vsyncpa [#allocation6], 1 }

</bundles_post_ra>
